<compile_context>
chip_gen: v5e
topology: v5e:2x2
jax: 0.10.0
libtpu: 0.0.40
codegen_flags: <defaults>
</compile_context>

<pallas_src>
import functools

import jax
import jax.numpy as jnp
from jax import lax
from jax.experimental import pallas as pl
from jax.experimental.pallas import tpu as pltpu

GAMMA = 1.5
ALPHA = 0.25
LANES = 128
CHUNK_ROWS = 256          # rows per in-kernel chunk: 256*128*4B = 128 KiB f32
PAD_LOGIT = -200.0        # exp(-200) underflows to 0 in f32 -> padded loss == 0.0


@functools.lru_cache(maxsize=None)
def _max_block_rows():
    """Generation-aware tile height (rows of 128 lanes) per grid step."""
    try:
        kind = jax.devices()[0].device_kind.lower()
    except Exception:
        return 2048
    if "v6" in kind or "v7" in kind:
        # 4 MiB per f32 input tile; reduce path 2x2x4=16 MiB, 'none' path 24 MiB:
        # both fit the 32 MiB scoped-VMEM default on v6e / v7x.
        return 8192
    # v5e (16 MiB scoped default) and unknown devices: 2 MiB tiles
    # (reduce 8 MiB, 'none' 12 MiB -> no vmem_limit override needed).
    return 4096


def _qfocal_elementwise(x, y, gamma, alpha):
    x = x.astype(jnp.float32)
    y = y.astype(jnp.float32)
    e = jnp.exp(-jnp.abs(x))                            # one exp, reused below
    bce = jnp.maximum(x, 0.0) - x * y + jnp.log1p(e)
    p = jnp.where(x >= 0.0, 1.0, e) / (1.0 + e)         # exact sigmoid(x)
    alpha_factor = (1.0 - alpha) + y * (2.0 * alpha - 1.0)
    d = jnp.abs(y - p)
    if gamma == 1.5:
        modulating = d * jnp.sqrt(d)                    # |d|**1.5 without pow
    elif gamma == 2.0:
        modulating = d * d
    elif gamma == 1.0:
        modulating = d
    else:
        modulating = jnp.power(d, gamma)
    return bce * alpha_factor * modulating


def _qfocal_reduce_kernel(pred_ref, true_ref, out_ref, *, gamma, alpha, block_rows):
    """Sums the loss of one (block_rows,128) tile into a resident (8,128) output."""
    i = pl.program_id(1)

    @pl.when(i == 0)
    def _():
        out_ref[...] = jnp.zeros_like(out_ref)

    def chunk_sum(r0, nrows):
        loss = _qfocal_elementwise(pred_ref[pl.ds(r0, nrows), :],
                                   true_ref[pl.ds(r0, nrows), :], gamma, alpha)
        # VPU-only partial reduction into an (8,128) vreg group; the expensive
        # cross-lane reduce happens once in the wrapper on <= 16x128 values.
        return loss.reshape(-1, 8, LANES).sum(axis=0)

    n_full = block_rows // CHUNK_ROWS
    rem = block_rows % CHUNK_ROWS               # multiple of 8 by construction

    if n_full > 0:
        def body(c, carry):
            r0 = pl.multiple_of(c * CHUNK_ROWS, CHUNK_ROWS)
            out_ref[...] += chunk_sum(r0, CHUNK_ROWS)
            return carry
        lax.fori_loop(0, n_full, body, 0)
    if rem > 0:
        out_ref[...] += chunk_sum(n_full * CHUNK_ROWS, rem)


def _qfocal_none_kernel(pred_ref, true_ref, out_ref, *, gamma, alpha, block_rows):
    def do_chunk(r0, nrows):
        loss = _qfocal_elementwise(pred_ref[pl.ds(r0, nrows), :],
                                   true_ref[pl.ds(r0, nrows), :], gamma, alpha)
        out_ref[pl.ds(r0, nrows), :] = loss.astype(out_ref.dtype)

    n_full = block_rows // CHUNK_ROWS
    rem = block_rows % CHUNK_ROWS

    if n_full > 0:
        def body(c, carry):
            r0 = pl.multiple_of(c * CHUNK_ROWS, CHUNK_ROWS)
            do_chunk(r0, CHUNK_ROWS)
            return carry
        lax.fori_loop(0, n_full, body, 0)
    if rem > 0:
        do_chunk(n_full * CHUNK_ROWS, rem)


def _slab_geometry(n):
    """Return (rows, block_rows, num_blocks, split) for an n-element problem."""
    rows_raw = max(1, -(-n // LANES))
    if rows_raw <= 8:
        return 8, 8, 1, 1
    max_rows = _max_block_rows()
    # Even block count -> both TensorCores always get equal work on megacore.
    num_blocks = max(2, 2 * (-(-rows_raw // (2 * max_rows))))
    block_rows = -(-rows_raw // num_blocks)
    block_rows = ((block_rows + 7) // 8) * 8
    rows = block_rows * num_blocks
    return rows, block_rows, num_blocks, 2


def _to_slab(a, rows, pad_value):
    """Flatten to a lane-dense (rows, 128) slab; keep the original dtype.

    When rows*128 == a.size this is a free reshape (no pad, no copy)."""
    flat = jnp.reshape(a, (-1,))
    n = flat.shape[0]
    n_pad = rows * LANES
    if n_pad != n:
        flat = jnp.pad(flat, (0, n_pad - n), constant_values=pad_value)
    return jnp.reshape(flat, (rows, LANES))


def qfocal_loss(pred, true, gamma=GAMMA, alpha=ALPHA, reduction="mean"):
    """QFocalLoss(nn.BCEWithLogitsLoss(), gamma, alpha)(pred, true)."""
    assert pred.shape == true.shape
    orig_shape = pred.shape
    n = pred.size
    rows, block_rows, num_blocks, split = _slab_geometry(n)
    steps = num_blocks // split

    if reduction == "none":
        # Pad values are irrelevant here (padded lanes are sliced off afterwards).
        p2 = _to_slab(pred, rows, 0.0)
        t2 = _to_slab(true, rows, 0.0)
        out_dtype = jnp.promote_types(pred.dtype, true.dtype)
        spec = pl.BlockSpec((block_rows, LANES), lambda i: (i, 0))
        out = pl.pallas_call(
            functools.partial(_qfocal_none_kernel, gamma=gamma, alpha=alpha,
                              block_rows=block_rows),
            out_shape=jax.ShapeDtypeStruct((rows, LANES), out_dtype),
            grid_spec=pltpu.PrefetchScalarGridSpec(
                num_scalar_prefetch=0,
                grid=(num_blocks,),
                in_specs=[spec, spec],
                out_specs=spec,
            ),
            compiler_params=pltpu.CompilerParams(
                dimension_semantics=("parallel",)),
        )(p2, t2)
        if rows * LANES == n:
            return jnp.reshape(out, orig_shape)
        return jnp.reshape(jnp.reshape(out, (-1,))[:n], orig_shape)

    if reduction not in ("mean", "sum"):
        raise ValueError(reduction)

    # Padded elements contribute exactly 0 (pred=-200 -> bce=0, modulating=0),
    # so no mask stream is needed.
    p2 = _to_slab(pred, rows, PAD_LOGIT)
    t2 = _to_slab(true, rows, 0.0)

    # Leading "parallel" axis shards the reduction across the 2 TCs on v7x;
    # on 1-TC chips it is just an outer loop producing independent partials.
    in_spec = pl.BlockSpec((block_rows, LANES),
                           lambda c, i: (c * steps + i, 0))
    out_spec = pl.BlockSpec((8, LANES), lambda c, i: (c, 0))

    partials = pl.pallas_call(
        functools.partial(_qfocal_reduce_kernel, gamma=gamma, alpha=alpha,
                          block_rows=block_rows),
        out_shape=jax.ShapeDtypeStruct((split * 8, LANES), jnp.float32),
        grid_spec=pltpu.PrefetchScalarGridSpec(
            num_scalar_prefetch=0,
            grid=(split, steps),
            in_specs=[in_spec, in_spec],
            out_specs=out_spec,
        ),
        compiler_params=pltpu.CompilerParams(
            dimension_semantics=("parallel", "arbitrary")),
    )(p2, t2)

    # One tiny cross-lane reduce on <= 16x128 partials.
    total = jnp.sum(partials, dtype=jnp.float32)
    if reduction == "mean":
        return total / jnp.float32(n)
    return total


def _reference(pred, true, gamma=GAMMA, alpha=ALPHA, reduction="mean"):
    x = pred.astype(jnp.float32)
    y = true.astype(jnp.float32)
    bce = jnp.maximum(x, 0.0) - x * y + jnp.log1p(jnp.exp(-jnp.abs(x)))
    p = jax.nn.sigmoid(x)
    af = y * alpha + (1.0 - y) * (1.0 - alpha)
    mf = jnp.power(jnp.abs(y - p), gamma)
    loss = bce * af * mf
    if reduction == "mean":
        return jnp.mean(loss)
    if reduction == "sum":
        return jnp.sum(loss)
    return loss


if __name__ == "__main__":
    key = jax.random.PRNGKey(0)
    k1, k2, k3, k4 = jax.random.split(key, 4)

    # pred: raw logits, true: soft quality targets in [0, 1]  (NCHW-shaped).
    pred = jax.random.normal(k1, (2, 4, 16, 16), dtype=jnp.float32) * 2.0
    true = jax.random.uniform(k2, (2, 4, 16, 16), dtype=jnp.float32)

    out_mean = jax.block_until_ready(qfocal_loss(pred, true, reduction="mean"))
    ref_mean = _reference(pred, true, reduction="mean")
    assert jnp.allclose(out_mean, ref_mean, rtol=1e-4, atol=1e-6), (out_mean, ref_mean)

    out_sum = jax.block_until_ready(qfocal_loss(pred, true, reduction="sum"))
    ref_sum = _reference(pred, true, reduction="sum")
    assert jnp.allclose(out_sum, ref_sum, rtol=1e-4, atol=1e-6), (out_sum, ref_sum)

    out_none = jax.block_until_ready(qfocal_loss(pred, true, reduction="none"))
    ref_none = _reference(pred, true, reduction="none")
    assert jnp.allclose(out_none, ref_none, rtol=1e-4, atol=1e-5)

    # Exercise the mask-free padding path (flat size not a multiple of 128).
    pred_r = jax.random.normal(k3, (3, 5, 7, 11), dtype=jnp.float32) * 2.0
    true_r = jax.random.uniform(k4, (3, 5, 7, 11), dtype=jnp.float32)
    out_r = jax.block_until_ready(qfocal_loss(pred_r, true_r, reduction="mean"))
    ref_r = _reference(pred_r, true_r, reduction="mean")
    assert jnp.allclose(out_r, ref_r, rtol=1e-4, atol=1e-6), (out_r, ref_r)

    print("KERNEL_OK")
</pallas_src>

<mosaic_0001>
module attributes {stable_mosaic.version = 11 : i64} {
  func.func @_qfocal_reduce_kernel(%arg0: i32, %arg1: i32, %arg2: memref<8x128xf32, #tpu.memory_space<vmem>>, %arg3: memref<8x128xf32, #tpu.memory_space<vmem>>, %arg4: memref<8x128xf32, #tpu.memory_space<vmem>>) attributes {dimension_semantics = [#tpu.dimension_semantics<parallel>, #tpu.dimension_semantics<arbitrary>], iteration_bounds = array<i64: 2, 1>, scalar_prefetch = 0 : i64, scratch_operands = 0 : i64, tpu.core_type = #tpu.core_type<tc>, window_params = [{transform_indices = @transform_0, window_bounds = array<i64: 8, 128>}, {transform_indices = @transform_1, window_bounds = array<i64: 8, 128>}, {transform_indices = @transform_2, window_bounds = array<i64: 8, 128>}]} {
    %c0_i32 = arith.constant 0 : i32
    %0 = arith.cmpi eq, %arg1, %c0_i32 : i32
    %1 = arith.extui %0 : i1 to i32
    %c0_i32_0 = arith.constant 0 : i32
    %2 = arith.cmpi ne, %1, %c0_i32_0 : i32
    scf.if %2 {
      %cst_15 = arith.constant 0.000000e+00 : f32
      %37 = vector.broadcast %cst_15 : f32 to vector<8x128xf32>
      %c0_16 = arith.constant 0 : index
      %c0_17 = arith.constant 0 : index
      %38 = vector.load %arg4[%c0_16, %c0_17] : memref<8x128xf32, #tpu.memory_space<vmem>>, vector<8x128xf32>
      tpu.vector_store %arg4[%c0_16, %c0_17], %37 {strides = array<i32>} : memref<8x128xf32, #tpu.memory_space<vmem>>, vector<8x128xf32>,
    } else {
    }
    %c0 = arith.constant 0 : index
    %c0_1 = arith.constant 0 : index
    %3 = vector.load %arg4[%c0, %c0_1] : memref<8x128xf32, #tpu.memory_space<vmem>>, vector<8x128xf32>
    %c0_2 = arith.constant 0 : index
    %c0_3 = arith.constant 0 : index
    %4 = vector.load %arg2[%c0_2, %c0_3] : memref<8x128xf32, #tpu.memory_space<vmem>>, vector<8x128xf32>
    %c0_4 = arith.constant 0 : index
    %c0_5 = arith.constant 0 : index
    %5 = vector.load %arg3[%c0_4, %c0_5] : memref<8x128xf32, #tpu.memory_space<vmem>>, vector<8x128xf32>
    %6 = math.absf %4 : vector<8x128xf32>
    %cst = arith.constant 0.000000e+00 : f32
    %7 = vector.broadcast %cst : f32 to vector<8x128xf32>
    %8 = arith.subf %7, %6 : vector<8x128xf32>
    %9 = math.exp %8 : vector<8x128xf32>
    %cst_6 = arith.constant 0.000000e+00 : f32
    %10 = vector.broadcast %cst_6 : f32 to vector<8x128xf32>
    %11 = arith.maximumf %4, %10 : vector<8x128xf32>
    %12 = arith.mulf %4, %5 : vector<8x128xf32>
    %13 = arith.subf %11, %12 : vector<8x128xf32>
    %14 = math.log1p %9 : vector<8x128xf32>
    %15 = arith.addf %13, %14 : vector<8x128xf32>
    %cst_7 = arith.constant 0.000000e+00 : f32
    %16 = vector.broadcast %cst_7 : f32 to vector<8x128xf32>
    %17 = arith.cmpf oge, %4, %16 : vector<8x128xf32>
    %cst_8 = arith.constant 1.000000e+00 : f32
    %18 = vector.broadcast %cst_8 : f32 to vector<8x128xf32>
    %19 = arith.select %17, %18, %9 : vector<8x128xi1>, vector<8x128xf32>
    %cst_9 = arith.constant 1.000000e+00 : f32
    %20 = vector.broadcast %cst_9 : f32 to vector<8x128xf32>
    %21 = arith.addf %20, %9 : vector<8x128xf32>
    %22 = arith.divf %19, %21 : vector<8x128xf32>
    %cst_10 = arith.constant -5.000000e-01 : f32
    %23 = vector.broadcast %cst_10 : f32 to vector<8x128xf32>
    %24 = arith.mulf %5, %23 : vector<8x128xf32>
    %cst_11 = arith.constant 7.500000e-01 : f32
    %25 = vector.broadcast %cst_11 : f32 to vector<8x128xf32>
    %26 = arith.addf %25, %24 : vector<8x128xf32>
    %27 = arith.subf %5, %22 : vector<8x128xf32>
    %28 = math.absf %27 : vector<8x128xf32>
    %29 = math.sqrt %28 : vector<8x128xf32>
    %30 = arith.mulf %28, %29 : vector<8x128xf32>
    %31 = arith.mulf %15, %26 : vector<8x128xf32>
    %32 = arith.mulf %31, %30 : vector<8x128xf32>
    %33 = vector.shape_cast %32 : vector<8x128xf32> to vector<1x8x128xf32>
    %cst_12 = arith.constant dense<0.000000e+00> : vector<8x128xf32>
    %34 = vector.multi_reduction <add>, %33, %cst_12 [0] : vector<1x8x128xf32> to vector<8x128xf32>
    %35 = arith.addf %3, %34 : vector<8x128xf32>
    %c0_13 = arith.constant 0 : index
    %c0_14 = arith.constant 0 : index
    %36 = vector.load %arg4[%c0_13, %c0_14] : memref<8x128xf32, #tpu.memory_space<vmem>>, vector<8x128xf32>
    tpu.vector_store %arg4[%c0_13, %c0_14], %35 {strides = array<i32>} : memref<8x128xf32, #tpu.memory_space<vmem>>, vector<8x128xf32>,
    return
  }
  func.func @transform_0(%arg0: i32, %arg1: i32) -> (i32, i32) {
    %c1_i32 = arith.constant 1 : i32
    %0 = arith.muli %arg0, %c1_i32 : i32
    %1 = arith.addi %0, %arg1 : i32
    %c0_i32 = arith.constant 0 : i32
    %c0_i32_0 = arith.constant 0 : i32
    return %1, %c0_i32 : i32, i32
  }
  func.func @transform_1(%arg0: i32, %arg1: i32) -> (i32, i32) {
    %c1_i32 = arith.constant 1 : i32
    %0 = arith.muli %arg0, %c1_i32 : i32
    %1 = arith.addi %0, %arg1 : i32
    %c0_i32 = arith.constant 0 : i32
    %c0_i32_0 = arith.constant 0 : i32
    return %1, %c0_i32 : i32, i32
  }
  func.func @transform_2(%arg0: i32, %arg1: i32) -> (i32, i32) {
    %c0_i32 = arith.constant 0 : i32
    %c0_i32_0 = arith.constant 0 : i32
    return %arg0, %c0_i32 : i32, i32
  }
}

</mosaic_0001>

<bundles_post_ra>
// kernel: tpu_custom_call.1
= control target key start
LH: loop header
LB: loop body
LE: loop exit
PB: predicated region body
PF: predicated region fallthrough
CT: control target
= control target key end

     0   :  { %7 = vsyncpa [#allocation3], 0  ;;  %s792_s0 = inlined_call_operand.hbm [shape: f32[16,128], index: 0, kind: input, shape index: {}]   ;;  %s793_s1 = inlined_call_operand.hbm [shape: f32[16,128], index: 1, kind: input, shape index: {}]   ;;  %s794_s2 = inlined_call_operand.hbm [shape: f32[16,128], index: 2, kind: output, shape index: {}]  }
   0x1   :  { %9 = vsyncpa [#allocation3 + $0x1], 0 }
   0x2   :  { %10 = vsyncpa [#allocation6], 0 }
   0x3   :  { %12 = vsyncpa [#allocation6 + $0x1], 0 }
   0x4   :  { %13 = vsyncpa [#allocation4], 0 }
   0x5   :  { %15 = vsyncpa [#allocation4 + $0x1], 0  ;;  %s659_s9 = smov 0   ;;  %s661_s10 = smov 0  }
   0x6   :  { %s663_s11 = smov 0   ;;  %s665_s12 = smov 0  }
   0x7   :  { %s667_s13 = smov 0   ;;  %s669_s14 = smov 0  }
   0x8 LB: > { %s404_s15 = sadd.s32 4294967295, %s642_s14   ;;  %s405_s16 = sadd.s32 4294967294, %s642_s14   ;;  %s642_s14 = sphi %s669_s14, %s21_s14   ;;  %s638_s13 = sphi %s667_s13, %s803_s13   ;;  %s634_s12 = sphi %s665_s12, %s802_s12   ;;  %s630_s11 = sphi %s663_s11, %s801_s11   ;;  %s626_s10 = sphi %s661_s10, %s800_s10   ;;  %s622_s9 = sphi %s659_s9, %s799_s9  }
   0x9   : > { %s33_s17 = sadd.s32 1, %s638_s13  ;;  %s42_s18 = sadd.s32 1, %s630_s11 }
   0xa   : > { %p35_p0 = scmp.ge.s32.totalorder %s33_s17, 2  ;;  %p49_p1 = scmp.ne.s32.totalorder %s630_s11, %s626_s10 }
   0xb   : > { %p50_p2 = scmp.eq.s32.totalorder %s642_s14, 0  ;;  %p55_p3 = scmp.ne.s32.totalorder %s626_s10, %s622_s9 }
   0xc   : > { %s805_s17 = smov (%p35_p0, %s33_s17), 0  ;;  %p56_p5 = scmp.eq.s32.totalorder %s404_s15, 0 }
   0xd   : > { %p700_p4 = por %p50_p2, %p49_p1  ;;  %s39_s20 = ssub.s32 %s638_s13, %s805_s17 }
   0xe   : > { %p107_p6 = scmp.eq.s32.totalorder %s404_s15, 1  ;;  %p40_p7 = scmp.eq.s32.totalorder %s39_s20, 0 }
   0xf   : > { %p706_p8 = por %p56_p5, %p55_p3  ;;  %p113_p10 = scmp.eq.s32.totalorder %s405_s16, 1 }
  0x10   : > { %p710_p9 = por %p107_p6, %p49_p1  ;;  %p407_p12 = scmp.ge.s32.totalorder %s642_s14, 2 }
  0x11   : > { %s715_s23 = scalar_select %p40_p7, %s630_s11, %s42_s18  }
  0x12   : > { %p717_p11 = por %p113_p10, %p55_p3  ;;  %p437_p13 = scmp.lt.s32.totalorder %s642_s14, 2 }
  0x13   : > { %s133_s25 = sand.u32 1, %s630_s11   ;;  %s409_s27 = sshll.u32 %s638_s13, 3 }
  0x14   : > { %s408_s26 = sshll.u32 %s133_s25, 3  ;;  %s142_s30 = scalar_lea.hbm %s792_s0, %s409_s27 }
  0x15   : > { %s137_s3 = scalar_lea.vmem [#allocation2], %s408_s26  ;;  %s144_s5 = sshll.u32 %s142_s30, 4  ;;  %s145_s5 = int_to_ptr.hbm [resolvable:$true] %s144_s5 }
  0x16   : > { %s146_s4 = sshll.u32 %s137_s3, 4  ;;  %p427_p0 = pnand %p437_p13, %p700_p4  ;;  %s147_s4 = int_to_ptr.vmem [resolvable:$true] %s146_s4 }
  0x17   : > { %p412_p1 = scmp.ge.s32.totalorder %s642_s14, 1  ;;  %p171_p2 = scmp.lt.s32.totalorder %s642_s14, 3 }
  0x18   : > { %s134_s6 = scalar_lea.sflag [#allocation3], %s133_s25  ;;  %s162_s15 = scalar_lea.hbm %s793_s1, %s409_s27 }
  0x19   : > { %429 = dma.hbm_to_vmem [thread:$0]  (!%p427_p0), %s145_s5, 128, %s147_s4, %s134_s6  }
  0x1a   : > { %p172_p3 = pnand %p412_p1, %p171_p2  ;;  %s157_s16 = scalar_lea.vmem [#allocation5], %s408_s26 }
  0x1b   : > { %s166_s18 = sshll.u32 %s157_s16, 4  ;;  %s164_s20 = sshll.u32 %s162_s15, 4  ;;  %s167_s18 = int_to_ptr.vmem [resolvable:$true] %s166_s18  ;;  %s165_s20 = int_to_ptr.hbm [resolvable:$true] %s164_s20 }
  0x1c   : > { %s154_s28 = scalar_lea.sflag [#allocation6], %s133_s25  ;;  %175 = sbr.rel (%p172_p3) target bundleno = 103 (0x67), region = 28 }
  0x1d   : > { %432 = dma.hbm_to_vmem [thread:$0]  (!%p427_p0), %s165_s20, 128, %s167_s18, %s154_s28  }
  0x1e   : > { %s736_s19 = sand.u32 (!%p172_p3), 1, %s626_s10  }
  0x1f   : > { %s739_s29 = sshll.u32 (!%p172_p3), %s736_s19, 3  ;;  %s178_s30 = scalar_lea.sflag (!%p172_p3), [#allocation3], %s736_s19 }
  0x20   : > { %s181_s3 = scalar_lea.vmem (!%p172_p3), [#allocation2], %s739_s29 }
  0x21   : > { %609 = dma.done.wait (%p706_p8), %s178_s30, 128  }
  0x22   : > { %611 = vsyncadd (%p706_p8), %s178_s30, 4294967168  ;;  %s188_s25 = scalar_lea.sflag [#allocation6], %s736_s19  ;;  %s191_s26 = scalar_lea.vmem [#allocation5], %s739_s29 }
  0x23   : > { %613 = dma.done.wait (%p706_p8), %s188_s25, 128  }
  0x24   : > { %615 = vsyncadd (%p706_p8), %s188_s25, 4294967168  ;;  %v226_v0 = vld [vmem:[%s181_s3] sm:$0xff]  ;;  %v227_v16 = vld [vmem:[%s191_s26] sm:$0xff]  ;;  %s417_s21 = sshll.u32 %s634_s12, 3  ;;  %s217_s6 = scalar_lea.vmem [#allocation7], %s739_s29 }
  0x25   : > { %v228_v1 = vand.u32 2147483647, %v226_v0  ;;  %vm245_vm2 = vcmp.ge.f32.partialorder %v226_v0, 0.0  ;;  %v232_v26 = vmax.f32 %v226_v0, 0.0  ;;  %v233_v27 = vmul.f32 %v227_v16, %v226_v0  ;;  %s296_s5 = scalar_lea.hbm %s794_s2, %s417_s21  ;;  %s298_s7 = sshll.u32 %s217_s6, 4  ;;  %s299_s7 = int_to_ptr.vmem [resolvable:$true] %s298_s7 }
  0x26   : > { %v263_v33 = vmul.f32 -0.5, %v227_v16  ;;  %s300_s8 = sshll.u32 %s296_s5, 4  ;;  %s286_s15 = scalar_lea.sflag [#allocation4], %s736_s19  ;;  %s301_s8 = int_to_ptr.hbm [resolvable:$true] %s300_s8 }
  0x27   : > { %v229_v2 = vsub.f32 0.0, %v228_v1  ;;  %v234_v32 = vsub.f32 %v232_v26, %v233_v27  ;;  %s570_s12 = sshra.s32 %s301_s8, 4  ;;  %s576_s28 = scalar_lea.hbm %s794_s2, 16  ;;  %s571_s12 = int_to_ptr.hbm [resolvable:$true] %s570_s12 }
  0x28   : > { %v264_v38 = vadd.f32 0.75, %v263_v33  ;;  %s572_s16 = scalar_lea.hbm %s571_s12, 8  ;;  %p577_p7 = scmp.lt.s32.totalorder %s571_s12, %s794_s2 }
  0x29   : > { %v230_v3 = vmul.f32 1.442695, %v229_v2  ;;  %p573_p4 = scmp.ne.s32.totalorder %s571_s12, %s572_s16  ;;  %p578_p8 = scmp.lt.s32.totalorder %s576_s28, %s572_s16 }
  0x2b   : > { %488 = vpow2.f32 %v230_v3  ;;  %p574_p5 = pnand %p573_p4, %p710_p9  ;;  %p579_p10 = por %p578_p8, %p577_p7 }
  0x2d   : > { %p575_p6 = pneg %p574_p5 }
  0x2f   : > { %p580_p13 = pnand %p579_p10, %p575_p6 }
  0x31   : > { %v489_v4 = vpop.eup %488 }
  0x32   : > { %v235_v5 = vadd.f32 1.0, %v489_v4  ;;  %v246_v14 = vsel %vm245_vm2, 1.0, %v489_v4  ;;  %v238_v21 = vmul.f32 -0.5, %v489_v4  ;;  %v241_v24 = vand.u32 2147483647, %v489_v4 }
  0x34   : > { %490 = vrcp.f32 %v235_v5  ;;  %v259_v8 = vand.u32 2147483648, %v235_v5  ;;  %vm253_vm0 = vweird.f32 %v235_v5  ;;  %v257_v10 = vand.u32 2147483647, %v235_v5 }
  0x35   : > { %492 = vlog2.f32 %v235_v5  ;;  %v239_v22 = vadd.f32 1.0, %v238_v21  ;;  %vm242_vm5 = vcmp.lt.f32.partialorder %v241_v24, 0.0004427343 }
  0x36   : > { %v260_v12 = vor.u32 1.1754944e-38, %v259_v8  ;;  %vm258_vm4 = vcmp.eq.f32.partialorder %v257_v10, 8.507059e+37 }
  0x37   : > { %v240_v30 = vmul.f32 %v489_v4, %v239_v22 }
  0x3a   : > { %v491_v6 = vpop.eup %490 }
  0x3b   : > { %v249_v7 = vmul.f32 %v491_v6, %v235_v5  ;;  %vm254_vm1 = vweird.f32 %v491_v6  ;;  %v493_v23 = vpop.eup %492 }
  0x3c   : > { %vm255_vm3 = vmor %vm253_vm0, %vm254_vm1  ;;  %v237_v29 = vmul.f32 0.6931472, %v493_v23 }
  0x3d   : > { %v250_v9 = vsub.f32 1.0, %v249_v7 }
  0x3e   : > { %v243_v35 = vsel %vm242_vm5, %v240_v30, %v237_v29 }
  0x3f   : > { %v251_v11 = vmul.f32 %v491_v6, %v250_v9  ;;  %v244_v37 = vadd.f32 %v243_v35, %v234_v32 }
  0x41   : > { %v252_v13 = vadd.f32 %v491_v6, %v251_v11  ;;  %v280_v43 = vmul.f32 %v264_v38, %v244_v37 }
  0x43   : > { %v256_v15 = vsel %vm255_vm3, %v491_v6, %v252_v13 }
  0x44   : > { %v261_v17 = vsel %vm258_vm4, %v260_v12, %v256_v15 }
  0x45   : > { %v262_v18 = vmul.f32 %v261_v17, %v246_v14 }
  0x47   : > { %v265_v19 = vsub.f32 %v227_v16, %v262_v18 }
  0x49   : > { %v266_v20 = vand.u32 2147483647, %v265_v19 }
  0x4b   : > { %494 = vrsqrt.f32 %v266_v20  ;;  %vm274_vm6 = vcmp.eq.f32.partialorder %v266_v20, inf  ;;  %v277_v40 = vand.u32 2147483648, %v266_v20  ;;  %vm276_vm7 = vcmp.eq.f32.partialorder %v266_v20, 0.0 }
  0x51   : > { %v495_v25 = vpop.eup %494 }
  0x52   : > { %v268_v28 = vmul.f32 %v495_v25, %v266_v20 }
  0x54   : > { %v269_v31 = vmul.f32 %v495_v25, %v268_v28 }
  0x56   : > { %v270_v34 = vmul.f32 0.5, %v269_v31 }
  0x58   : > { %v271_v36 = vsub.f32 1.5, %v270_v34 }
  0x5a   : > { %v272_v39 = vmul.f32 %v495_v25, %v271_v36 }
  0x5c   : > { %v273_v41 = vmul.f32 %v272_v39, %v266_v20 }
  0x5e   : > { %v275_v42 = vsel %vm274_vm6, %v266_v20, %v273_v41 }
  0x5f   : > { %v278_v44 = vsel %vm276_vm7, %v277_v40, %v275_v42 }
  0x60   : > { %v279_v45 = vmul.f32 %v278_v44, %v266_v20 }
  0x62   : > { %v281_v46 = vmul.f32 %v280_v43, %v279_v45 }
  0x64   : > { %284 = vst [vmem:[%s217_s6] sm:$0xff] %v281_v46 }
  0x65   : > { %583 = shalt.err (!%p580_p13)
}
  0x66   : > { %424 = dma.vmem_to_hbm [thread:$0]  (%p710_p9), %s299_s7, 128, %s301_s8, %s286_s15  }
  0x67 PF: > { %s312_s19 = sand.u32 1, %s622_s9   ;;  %p434_p0 = pnand %p407_p12, %p717_p11 }
  0x68   : > { %s313_s3 = scalar_lea.sflag [#allocation4], %s312_s19 }
  0x69   : > { %p435_p1 = pneg %p434_p0 }
  0x6b   : > { %617 = dma.done.wait (%p435_p1), %s313_s3, 128  }
  0x6c   : > { %619 = vsyncadd (%p435_p1), %s313_s3, 4294967168  ;;  %s21_s14 = sadd.s32 1, %s642_s14   ;;  %s799_s9 = smov %s626_s10 }
  0x6d   : > { %p18_p2 = scmp.ge.s32.totalorder %s21_s14, 4   ;;  %s800_s10 = smov %s630_s11 }
  0x6e   : > { %s801_s11 = smov %s715_s23  ;;  %s802_s12 = smov %s638_s13 }
  0x6f   : > { %s803_s13 = smov %s805_s17  ;;  %20 = sbr.rel (!%p18_p2) target bundleno = 8 (0x8), region = 90 }
  0x74   :  { %319 = vsyncpa [#allocation3], 1 }
  0x75   :  { %321 = vsyncpa [#allocation3 + $0x1], 1 }
  0x76   :  { %322 = vsyncpa [#allocation6], 1 }
  0x77   :  { %324 = vsyncpa [#allocation6 + $0x1], 1 }
  0x78   :  { %325 = vsyncpa [#allocation4], 1 }
  0x79   :  { %327 = vsyncpa [#allocation4 + $0x1], 1 }

</bundles_post_ra>
